<compile_context>
chip_gen: v6e
topology: v6e:2x2x1
jax: 0.10.0
libtpu: 0.0.40
codegen_flags: <defaults>
</compile_context>

<pallas_src>
import functools

import jax
import jax.numpy as jnp
from jax.experimental import pallas as pl
from jax.experimental.pallas import tpu as pltpu


def _smooth_step_kernel(x_ref, o_ref, *, threshold, beta):
    # Elementwise sigmoid((x - threshold) * beta). Compute in f32 (VPU + EUP
    # exp), store back in the output's (original) dtype.
    x = x_ref[...].astype(jnp.float32)
    z = (x - jnp.float32(threshold)) * jnp.float32(beta)
    # torch.sigmoid(z) == 1 / (1 + exp(-z))
    o_ref[...] = (1.0 / (1.0 + jnp.exp(-z))).astype(o_ref.dtype)


def smooth_step(x, threshold, beta):
    """Elementwise sigmoid((x - threshold) * beta) for any shape / dtype."""
    orig_shape = x.shape
    orig_dtype = x.dtype
    total = x.size

    # Pick a lane-dense last dim (large multiple of 128) that divides the
    # flattened size so the reshape is a free view — no extra HBM pass.
    lane = None
    for cand in (1024, 512, 256, 128):
        if total % cand == 0:
            lane = cand
            break

    pad = 0
    if lane is None:
        # Ragged total: pad the flat vector up to a lane multiple (rare path;
        # single small tail pad, still far cheaper than the old full -inf pad).
        lane = 128
        pad = (-total) % lane
        flat = jnp.pad(x.reshape(-1), (0, pad))
    else:
        flat = x.reshape(-1)

    rows = (total + pad) // lane
    x2 = flat.reshape(rows, lane)

    # ~256K elements (~1 MiB in f32) per block: big enough to amortize the
    # per-grid-step overhead (~85% of HBM roofline per measured tile sweeps),
    # small enough that double-buffered in+out fits every generation's VMEM.
    tb_target = max(8, (1 << 18) // lane)   # multiple of 8 for lane in {128..1024}
    tb = min(tb_target, rows)               # tb == rows (full dim) is also legal
    grid = (pl.cdiv(rows, tb),)

    out2 = pl.pallas_call(
        functools.partial(_smooth_step_kernel,
                          threshold=float(threshold), beta=float(beta)),
        out_shape=jax.ShapeDtypeStruct((rows, lane), orig_dtype),
        grid=grid,
        in_specs=[pl.BlockSpec((tb, lane), lambda i: (i, 0))],
        out_specs=pl.BlockSpec((tb, lane), lambda i: (i, 0)),
        compiler_params=pltpu.CompilerParams(
            dimension_semantics=("parallel",)),
    )(x2)

    out_flat = out2.reshape(-1)
    if pad:
        out_flat = out_flat[:total]
    return out_flat.reshape(orig_shape)


def _reference(x, threshold, beta):
    """Pure-JAX reference mirroring the PyTorch forward (torch.sigmoid)."""
    return jax.nn.sigmoid((x - threshold) * beta)


if __name__ == "__main__":
    key = jax.random.PRNGKey(0)
    # Module docstring: 4D input (b_size, weight, high, f_maps).
    B, W, H, F = 2, 4, 16, 16
    threshold = 0.5
    beta = 10.0

    x = jax.random.normal(key, (B, W, H, F), dtype=jnp.float32)

    y = smooth_step(x, threshold, beta)
    y = jax.block_until_ready(y)

    y_ref = _reference(x, threshold, beta)
    if not jnp.allclose(y, y_ref, atol=1e-5, rtol=1e-5):
        raise AssertionError("Pallas SmoothStepFunction does not match reference")

    print("KERNEL_OK")
</pallas_src>

<mosaic_0001>
module attributes {stable_mosaic.version = 11 : i64} {
  func.func @_smooth_step_kernel(%arg0: i32, %arg1: memref<2x1024xf32, #tpu.memory_space<vmem>>, %arg2: memref<2x1024xf32, #tpu.memory_space<vmem>>) attributes {dimension_semantics = [#tpu.dimension_semantics<parallel>], iteration_bounds = array<i64: 1>, scalar_prefetch = 0 : i64, scratch_operands = 0 : i64, tpu.core_type = #tpu.core_type<tc>, window_params = [{transform_indices = @transform_0, window_bounds = array<i64: 2, 1024>}, {transform_indices = @transform_1, window_bounds = array<i64: 2, 1024>}]} {
    %c0 = arith.constant 0 : index
    %c0_0 = arith.constant 0 : index
    %0 = vector.load %arg1[%c0, %c0_0] : memref<2x1024xf32, #tpu.memory_space<vmem>>, vector<2x1024xf32>
    %cst = arith.constant 5.000000e-01 : f32
    %1 = vector.broadcast %cst : f32 to vector<2x1024xf32>
    %2 = arith.subf %0, %1 : vector<2x1024xf32>
    %cst_1 = arith.constant 1.000000e+01 : f32
    %3 = vector.broadcast %cst_1 : f32 to vector<2x1024xf32>
    %4 = arith.mulf %2, %3 : vector<2x1024xf32>
    %cst_2 = arith.constant 0.000000e+00 : f32
    %5 = vector.broadcast %cst_2 : f32 to vector<2x1024xf32>
    %6 = arith.subf %5, %4 : vector<2x1024xf32>
    %7 = math.exp %6 : vector<2x1024xf32>
    %cst_3 = arith.constant 1.000000e+00 : f32
    %8 = vector.broadcast %cst_3 : f32 to vector<2x1024xf32>
    %9 = arith.addf %8, %7 : vector<2x1024xf32>
    %cst_4 = arith.constant 1.000000e+00 : f32
    %10 = vector.broadcast %cst_4 : f32 to vector<2x1024xf32>
    %11 = arith.divf %10, %9 : vector<2x1024xf32>
    %c0_5 = arith.constant 0 : index
    %c0_6 = arith.constant 0 : index
    %12 = vector.load %arg2[%c0_5, %c0_6] : memref<2x1024xf32, #tpu.memory_space<vmem>>, vector<2x1024xf32>
    tpu.vector_store %arg2[%c0_5, %c0_6], %11 {strides = array<i32>} : memref<2x1024xf32, #tpu.memory_space<vmem>>, vector<2x1024xf32>,
    return
  }
  func.func @transform_0(%arg0: i32) -> (i32, i32) {
    %c0_i32 = arith.constant 0 : i32
    %c0_i32_0 = arith.constant 0 : i32
    return %arg0, %c0_i32 : i32, i32
  }
  func.func @transform_1(%arg0: i32) -> (i32, i32) {
    %c0_i32 = arith.constant 0 : i32
    %c0_i32_0 = arith.constant 0 : i32
    return %arg0, %c0_i32 : i32, i32
  }
}

</mosaic_0001>

<bundles_post_ra>
// kernel: tpu_custom_call.1
= control target key start
LH: loop header
LB: loop body
LE: loop exit
PB: predicated region body
PF: predicated region fallthrough
CT: control target
= control target key end

     0   :  { %6 = vsyncpa [#allocation3], 0  ;;  %s130_s0 = inlined_call_operand.hbm [shape: f32[2,1024], index: 0, kind: input, shape index: {}]   ;;  %s131_s1 = inlined_call_operand.hbm [shape: f32[2,1024], index: 1, kind: output, shape index: {}]  }
   0x1   :  { %7 = vsyncpa [#allocation4], 0  ;;  %s112_s6 = smov [#allocation2]  }
   0x2   :  { %s14_s7 = sshll.u32 %s112_s6, 4  ;;  %s15_s7 = int_to_ptr.vmem [resolvable:$true] %s14_s7 }
   0x3   :  { %s76_s8 = scalar_lea.vmem %s15_s7, 256  ;;  %p81_p1 = scmp.lt.s32.totalorder %s15_s7, %s15_s7 }
   0x4   :  { %p77_p0 = scmp.ne.s32.totalorder %s15_s7, %s76_s8  ;;  %p82_p2 = scmp.lt.s32.totalorder %s76_s8, %s76_s8 }
   0x6   :  { %p83_p3 = por %p82_p2, %p81_p1 }
   0x8   :  { %p84_p4 = pnand %p83_p3, %p77_p0 }
   0xa   :  { %87 = shalt.err (!%p84_p4)
}
   0xb   :  { %17 = dma.hbm_to_vmem [thread:$0]  %s130_s0, 256, %s15_s7, [#allocation3]  }
   0xc   :  { %108 = dma.done.wait [#allocation3], 256  }
   0xd   :  { %109 = vsyncadd [#allocation3], 4294967040  ;;  %v21_v0 = vld [vmem:[#allocation2] sm:$0xff]  ;;  %v22_v1 = vld [vmem:[#allocation2 + $0x8] sm:$0xff]  ;;  %s113_s0 = smov [#allocation5]  }
   0xe   :  { %v56_v2 = vadd.f32 -0.5, %v21_v0  ;;  %v57_v3 = vadd.f32 -0.5, %v22_v1  ;;  %s47_s11 = sshll.u32 %s113_s0, 4  ;;  %s48_s11 = int_to_ptr.vmem [resolvable:$true] %s47_s11 }
   0xf   :  { %s88_s12 = scalar_lea.vmem %s48_s11, 256  ;;  %p93_p6 = scmp.lt.s32.totalorder %s48_s11, %s48_s11 }
  0x10   :  { %v25_v4 = vmul.f32 10.0, %v56_v2  ;;  %v26_v5 = vmul.f32 10.0, %v57_v3  ;;  %p89_p5 = scmp.ne.s32.totalorder %s48_s11, %s88_s12  ;;  %p94_p7 = scmp.lt.s32.totalorder %s88_s12, %s88_s12 }
  0x12   :  { %v27_v6 = vsub.f32 0.0, %v25_v4  ;;  %v28_v7 = vsub.f32 0.0, %v26_v5  ;;  %p95_p8 = por %p94_p7, %p93_p6 }
  0x14   :  { %v29_v8 = vmul.f32 1.442695, %v27_v6  ;;  %v31_v9 = vmul.f32 1.442695, %v28_v7  ;;  %p96_p9 = pnand %p95_p8, %p89_p5 }
  0x16   :  { %60 = vpow2.f32 %v29_v8 }
  0x17   :  { %62 = vpow2.f32 %v31_v9 }
  0x23   :  { %v61_v10 = vpop.eup %60 }
  0x24   :  { %v63_v11 = vpop.eup %62  ;;  %v33_v12 = vadd.f32 1.0, %v61_v10 }
  0x25   :  { %v34_v13 = vadd.f32 1.0, %v63_v11 }
  0x26   :  { %64 = vrcp.f32 %v33_v12 }
  0x27   :  { %66 = vrcp.f32 %v34_v13 }
  0x33   :  { %v65_v14 = vpop.eup %64 }
  0x34   :  { %v67_v15 = vpop.eup %66  ;;  %39 = vst [vmem:[#allocation5] sm:$0xff] %v65_v14 }
  0x35   :  { %40 = vst [vmem:[#allocation5 + $0x8] sm:$0xff] %v67_v15 }
  0x36   :  { %99 = shalt.err (!%p96_p9)
}
  0x37   :  { %50 = dma.vmem_to_hbm [thread:$0]  %s48_s11, 256, %s131_s1, [#allocation4]  }
  0x38   :  { %110 = dma.done.wait [#allocation4], 256  }
  0x39   :  { %111 = vsyncadd [#allocation4], 4294967040 }
  0x3a   :  { %54 = vsyncpa [#allocation3], 1 }
  0x3b   :  { %55 = vsyncpa [#allocation4], 1 }

</bundles_post_ra>
